<compile_context>
chip_gen: v6e
topology: v6e:2x2x1
jax: 0.10.0
libtpu: 0.0.40
codegen_flags: <defaults>
</compile_context>

<pallas_src>
import functools

import jax
import jax.numpy as jnp
from jax.experimental import pallas as pl
from jax.experimental.pallas import tpu as pltpu

_MIB = 1024 * 1024


def _round_up(x, m):
    return ((x + m - 1) // m) * m


def _sublane_multiple(dtype):
    # f32 -> 8, bf16 -> 16, fp8/int8 -> 32 (second-to-last dim tiling rule).
    return {4: 8, 2: 16, 1: 32}[jnp.dtype(dtype).itemsize]


def _vmem_capacity_bytes():
    """Per-TensorCore VMEM capacity; conservative fallback = v7x (64 MiB)."""
    try:
        cap = getattr(pltpu.get_tpu_info(), "vmem_capacity_bytes", None)
        if cap:
            return int(cap)
    except Exception:
        pass
    return 64 * _MIB


def _gated_attn_kernel(x_ref, wab_ref, bab_ref, wc_ref, bc_ref, a_ref, *,
                       d_pad, use_vpu_proj):
    """One N-tile of the gated attention head.

    x_ref:   [TN, L]         matmul dtype (f32 or bf16)
    wab_ref: [L, 2*d_pad]    packed [Wa|0 | Wb|0], matmul dtype
    bab_ref: [1, 2*d_pad]    packed [ba|0 | bb|0], f32
    wc_ref:  [1, d_pad] (C == 1) or [d_pad, C]   f32, zero-padded rows
    bc_ref:  [1, C]          f32
    a_ref:   [TN, C]         f32 output (attention logits)
    """
    x = x_ref[...]
    # Single MXU pass for both gate projections; f32 accumulation.
    z = (jnp.dot(x, wab_ref[...], preferred_element_type=jnp.float32)
         + bab_ref[...])                               # [TN, 2*d_pad] f32
    # d_pad is a multiple of 128, so both halves sit on 128-lane boundaries
    # (no cross-lane relayout even for small D).
    a = jnp.tanh(z[:, :d_pad])                         # [TN, d_pad]
    g = jax.nn.sigmoid(z[:, d_pad:])                   # [TN, d_pad]
    # TODO(synk): on v7x (bf16/fp8 inputs, 3.2 TB/s HBM) re-check whether the
    # tanh+sigmoid EUP work becomes co-critical before further MXU tuning.
    gated = a * g                                      # [TN, d_pad] f32

    if use_vpu_proj:
        # C == 1: VPU multiply + lane reduction keeps the MXU free; the
        # zero-padded wc lanes contribute exactly 0.
        out = jnp.sum(gated * wc_ref[...], axis=-1, keepdims=True) + bc_ref[...]
    else:
        out = (jnp.dot(gated, wc_ref[...], preferred_element_type=jnp.float32)
               + bc_ref[...])
    a_ref[...] = out.astype(a_ref.dtype)


def pack_params(wa, ba, wb, bb, wc, bc, *, matmul_dtype=jnp.float32):
    """Pack and cast parameters once (off the per-forward hot path).

    wa/wb: [L, D]; ba/bb: [1, D] or [D]; wc: [D, C]; bc: [1, C] or [C].
    matmul_dtype: dtype of the MXU inputs (x and the packed gate weight).
      jnp.bfloat16 is recommended on ALL TPU generations, including v5e
      (its MXU is bf16-native; f32 matmul is emulated via multiple passes).
      Accumulation and all tanh/sigmoid/gating math stay f32 in the kernel.
    """
    L, D = wa.shape
    C = wc.shape[-1]
    d_pad = _round_up(max(D, 128), 128)
    pad_d = d_pad - D

    wa_p = jnp.pad(wa.astype(jnp.float32), ((0, 0), (0, pad_d)))
    wb_p = jnp.pad(wb.astype(jnp.float32), ((0, 0), (0, pad_d)))
    w_ab = jnp.concatenate([wa_p, wb_p], axis=1).astype(matmul_dtype)  # [L, 2*d_pad]

    ba_p = jnp.pad(jnp.reshape(ba, (1, D)).astype(jnp.float32), ((0, 0), (0, pad_d)))
    bb_p = jnp.pad(jnp.reshape(bb, (1, D)).astype(jnp.float32), ((0, 0), (0, pad_d)))
    b_ab = jnp.concatenate([ba_p, bb_p], axis=1)                       # [1, 2*d_pad]

    wc_p = jnp.pad(wc.astype(jnp.float32), ((0, pad_d), (0, 0)))       # [d_pad, C]
    if C == 1:
        wc_p = jnp.reshape(wc_p, (1, d_pad))                           # lane-dense row
    bc_p = jnp.reshape(bc, (1, C)).astype(jnp.float32)

    return {"w_ab": w_ab, "b_ab": b_ab, "wc": wc_p, "bc": bc_p}


def attn_net_gated(x, params, *, block_n=2048, vmem_fraction=0.7):
    """Gated-attention forward: returns (A [N, C] float32, x)."""
    N, L = x.shape
    w_ab, b_ab, wc_p, bc_p = params["w_ab"], params["b_ab"], params["wc"], params["bc"]
    two_d_pad = w_ab.shape[1]
    d_pad = two_d_pad // 2
    C = bc_p.shape[-1]
    use_vpu_proj = (C == 1)

    mm_dtype = w_ab.dtype
    # For best perf the caller should already store x in mm_dtype (this cast
    # is a fallback that costs an extra HBM pass over x).
    x_mm = x if x.dtype == mm_dtype else x.astype(mm_dtype)
    itemsize = jnp.dtype(mm_dtype).itemsize
    mult = _sublane_multiple(mm_dtype)

    # ---- generation-aware tile size ------------------------------------
    vmem_budget = int(_vmem_capacity_bytes() * vmem_fraction)
    # Weights/biases have constant index maps (DMA'd once by the pipeline);
    # budget them as double-buffered anyway to stay conservative.
    resident = 2 * (w_ab.size * itemsize
                    + 4 * (b_ab.size + wc_p.size + bc_p.size))
    per_row = (2 * L * itemsize        # x tile, double buffered
               + 2 * 4 * C             # A tile, double buffered
               + 4 * 5 * d_pad)        # z + a + g + gated f32 live values
    tn = max(mult, (vmem_budget - resident) // per_row)
    tn = min(tn, block_n)
    # Keep >= 2 grid steps when N allows, so both v7x TensorCores get work.
    tn = min(tn, _round_up((N + 1) // 2, mult))
    tn = max(mult, (tn // mult) * mult)

    # Ragged tail (N % tn != 0) handled by masked out-of-bounds stores on the
    # last block — no jnp.pad / full-x HBM rewrite.
    grid = (pl.cdiv(N, tn),)

    kernel = functools.partial(_gated_attn_kernel, d_pad=d_pad,
                               use_vpu_proj=use_vpu_proj)

    A = pl.pallas_call(
        kernel,
        out_shape=jax.ShapeDtypeStruct((N, C), jnp.float32),
        grid_spec=pltpu.PrefetchScalarGridSpec(
            num_scalar_prefetch=0,
            grid=grid,
            in_specs=[
                pl.BlockSpec((tn, L), lambda i: (i, 0)),          # x tile
                pl.BlockSpec((L, two_d_pad), lambda i: (0, 0)),   # packed [Wa|Wb]
                pl.BlockSpec((1, two_d_pad), lambda i: (0, 0)),   # packed [ba|bb]
                pl.BlockSpec(wc_p.shape, lambda i: (0, 0)),       # Wc
                pl.BlockSpec((1, C), lambda i: (0, 0)),           # bc
            ],
            # NOTE: for C == 1 the output stays [tn, 1] (lane-sparse); output
            # bytes are 1/L of the x stream here, so the masked-store epilogue
            # is negligible against the large x tiles.
            out_specs=pl.BlockSpec((tn, C), lambda i: (i, 0)),
        ),
        compiler_params=pltpu.CompilerParams(
            # Independent rows -> shard the N axis across v7x's TensorCores.
            dimension_semantics=("parallel",),
            vmem_limit_bytes=vmem_budget,
        ),
    )(x_mm, w_ab, b_ab, wc_p, bc_p)

    # The module returns x unchanged: no kernel passthrough, no copy.
    return A, x


def init_params(key, L, D, n_classes, dtype=jnp.float32):
    """Deterministic synthetic init (PyTorch-Linear-style uniform bounds)."""
    ks = jax.random.split(key, 6)
    bound_l = 1.0 / (L ** 0.5)
    bound_d = 1.0 / (D ** 0.5)
    wa = jax.random.uniform(ks[0], (L, D), dtype, -bound_l, bound_l)
    ba = jax.random.uniform(ks[1], (1, D), dtype, -bound_l, bound_l)
    wb = jax.random.uniform(ks[2], (L, D), dtype, -bound_l, bound_l)
    bb = jax.random.uniform(ks[3], (1, D), dtype, -bound_l, bound_l)
    wc = jax.random.uniform(ks[4], (D, n_classes), dtype, -bound_d, bound_d)
    bc = jax.random.uniform(ks[5], (1, n_classes), dtype, -bound_d, bound_d)
    return wa, ba, wb, bb, wc, bc


def _reference(xf, wa, ba, wb, bb, wc, bc):
    with jax.default_matmul_precision("highest"):
        a = jnp.tanh(xf @ wa + ba)
        b = jax.nn.sigmoid(xf @ wb + bb)
        return (a * b) @ wc + bc


if __name__ == "__main__":
    # Small but tiling-exercising shapes (module defaults are L=1024, D=256).
    N, L, D, C = 64, 128, 32, 1
    key = jax.random.PRNGKey(0)
    k_x, k_p, k_p2 = jax.random.split(key, 3)
    x = jax.random.normal(k_x, (N, L), jnp.float32)

    # --- f32 path, C == 1 (VPU projection), even N, grid of 2 tiles --------
    wa, ba, wb, bb, wc, bc = init_params(k_p, L, D, C)
    params_f32 = pack_params(wa, ba, wb, bb, wc, bc, matmul_dtype=jnp.float32)
    A, x_out = attn_net_gated(x, params_f32)
    jax.block_until_ready(A)
    A_ref = _reference(x, wa, ba, wb, bb, wc, bc)
    assert A.shape == (N, C) and A.dtype == jnp.float32
    assert x_out is x                    # passthrough: no copy materialized
    assert bool(jnp.allclose(A, A_ref, atol=5e-3, rtol=5e-3)), \
        float(jnp.max(jnp.abs(A - A_ref)))

    # --- bf16 MXU-input path, ragged N (masked tail), C == 3 (MXU proj) ----
    N2, C2 = 57, 3
    wa2, ba2, wb2, bb2, wc2, bc2 = init_params(k_p2, L, D, C2)
    x2 = x[:N2].astype(jnp.bfloat16)     # caller stores x in the matmul dtype
    params_bf16 = pack_params(wa2, ba2, wb2, bb2, wc2, bc2,
                              matmul_dtype=jnp.bfloat16)
    A2, x2_out = attn_net_gated(x2, params_bf16, block_n=32)
    jax.block_until_ready(A2)
    A2_ref = _reference(x2.astype(jnp.float32), wa2, ba2, wb2, bb2, wc2, bc2)
    assert A2.shape == (N2, C2) and A2.dtype == jnp.float32
    assert x2_out is x2
    assert bool(jnp.allclose(A2, A2_ref, atol=5e-2, rtol=5e-2)), \
        float(jnp.max(jnp.abs(A2 - A2_ref)))

    print("KERNEL_OK")
</pallas_src>

<mosaic_0001>
module attributes {stable_mosaic.version = 11 : i64} {
  func.func @_gated_attn_kernel(%arg0: i32, %arg1: memref<32x128xf32, #tpu.memory_space<vmem>>, %arg2: memref<128x256xf32, #tpu.memory_space<vmem>>, %arg3: memref<1x256xf32, #tpu.memory_space<vmem>>, %arg4: memref<1x128xf32, #tpu.memory_space<vmem>>, %arg5: memref<1x1xf32, #tpu.memory_space<vmem>>, %arg6: memref<32x1xf32, #tpu.memory_space<vmem>>) attributes {dimension_semantics = [#tpu.dimension_semantics<parallel>], iteration_bounds = array<i64: 2>, scalar_prefetch = 0 : i64, scratch_operands = 0 : i64, tpu.core_type = #tpu.core_type<tc>, window_params = [{transform_indices = @transform_0, window_bounds = array<i64: 32, 128>}, {pipeline_mode = #tpu.pipeline_mode<synchronous>, transform_indices = @transform_1, window_bounds = array<i64: 128, 256>}, {pipeline_mode = #tpu.pipeline_mode<synchronous>, transform_indices = @transform_2, window_bounds = array<i64: 1, 256>}, {pipeline_mode = #tpu.pipeline_mode<synchronous>, transform_indices = @transform_3, window_bounds = array<i64: 1, 128>}, {pipeline_mode = #tpu.pipeline_mode<synchronous>, transform_indices = @transform_4, window_bounds = array<i64: 1, 1>}, {transform_indices = @transform_5, window_bounds = array<i64: 32, 1>}]} {
    %c0 = arith.constant 0 : index
    %c0_0 = arith.constant 0 : index
    %0 = vector.load %arg1[%c0, %c0_0] : memref<32x128xf32, #tpu.memory_space<vmem>>, vector<32x128xf32>
    %c0_1 = arith.constant 0 : index
    %c0_2 = arith.constant 0 : index
    %1 = vector.load %arg2[%c0_1, %c0_2] : memref<128x256xf32, #tpu.memory_space<vmem>>, vector<128x256xf32>
    %cst = arith.constant dense<0.000000e+00> : vector<32x256xf32>
    %2 = tpu.matmul %0, %1, %cst {dimension_numbers = #tpu.dot_dimension_numbers<[1], [0], [0], [1], [0, 0, 1, 1], [], []>} : vector<32x128xf32>, vector<128x256xf32>, vector<32x256xf32> -> vector<32x256xf32>
    %c0_3 = arith.constant 0 : index
    %c0_4 = arith.constant 0 : index
    %3 = vector.load %arg3[%c0_3, %c0_4] : memref<1x256xf32, #tpu.memory_space<vmem>>, vector<1x256xf32>
    %4 = vector.broadcast %3 : vector<1x256xf32> to vector<32x256xf32>
    %5 = arith.addf %2, %4 : vector<32x256xf32>
    %6 = vector.extract_strided_slice %5 {offsets = [0, 0], sizes = [32, 128], strides = [1, 1]} : vector<32x256xf32> to vector<32x128xf32>
    %7 = math.tanh %6 : vector<32x128xf32>
    %8 = vector.extract_strided_slice %5 {offsets = [0, 128], sizes = [32, 128], strides = [1, 1]} : vector<32x256xf32> to vector<32x128xf32>
    %9 = arith.negf %8 : vector<32x128xf32>
    %10 = math.exp %9 : vector<32x128xf32>
    %cst_5 = arith.constant 1.000000e+00 : f32
    %11 = vector.broadcast %cst_5 : f32 to vector<32x128xf32>
    %12 = arith.addf %11, %10 : vector<32x128xf32>
    %13 = arith.divf %11, %12 : vector<32x128xf32>
    %14 = arith.mulf %7, %13 : vector<32x128xf32>
    %c0_6 = arith.constant 0 : index
    %c0_7 = arith.constant 0 : index
    %15 = vector.load %arg4[%c0_6, %c0_7] : memref<1x128xf32, #tpu.memory_space<vmem>>, vector<1x128xf32>
    %16 = vector.broadcast %15 : vector<1x128xf32> to vector<32x128xf32>
    %17 = arith.mulf %14, %16 : vector<32x128xf32>
    %cst_8 = arith.constant dense<0.000000e+00> : vector<32xf32>
    %18 = vector.multi_reduction <add>, %17, %cst_8 [1] : vector<32x128xf32> to vector<32xf32>
    %19 = vector.shape_cast %18 : vector<32xf32> to vector<32x1xf32>
    %c0_9 = arith.constant 0 : index
    %c0_10 = arith.constant 0 : index
    %20 = vector.load %arg5[%c0_9, %c0_10] : memref<1x1xf32, #tpu.memory_space<vmem>>, vector<1x1xf32>
    %21 = vector.broadcast %20 : vector<1x1xf32> to vector<32x1xf32>
    %22 = arith.addf %19, %21 : vector<32x1xf32>
    %c0_11 = arith.constant 0 : index
    %c0_12 = arith.constant 0 : index
    %23 = vector.load %arg6[%c0_11, %c0_12] : memref<32x1xf32, #tpu.memory_space<vmem>>, vector<32x1xf32>
    tpu.vector_store %arg6[%c0_11, %c0_12], %22 {strides = array<i32>} : memref<32x1xf32, #tpu.memory_space<vmem>>, vector<32x1xf32>,
    return
  }
  func.func @transform_0(%arg0: i32) -> (i32, i32) {
    %c0_i32 = arith.constant 0 : i32
    %c0_i32_0 = arith.constant 0 : i32
    return %arg0, %c0_i32 : i32, i32
  }
  func.func @transform_1(%arg0: i32) -> (i32, i32) {
    %c0_i32 = arith.constant 0 : i32
    %c0_i32_0 = arith.constant 0 : i32
    %c0_i32_1 = arith.constant 0 : i32
    return %c0_i32, %c0_i32_0 : i32, i32
  }
  func.func @transform_2(%arg0: i32) -> (i32, i32) {
    %c0_i32 = arith.constant 0 : i32
    %c0_i32_0 = arith.constant 0 : i32
    %c0_i32_1 = arith.constant 0 : i32
    return %c0_i32, %c0_i32_0 : i32, i32
  }
  func.func @transform_3(%arg0: i32) -> (i32, i32) {
    %c0_i32 = arith.constant 0 : i32
    %c0_i32_0 = arith.constant 0 : i32
    %c0_i32_1 = arith.constant 0 : i32
    return %c0_i32, %c0_i32_0 : i32, i32
  }
  func.func @transform_4(%arg0: i32) -> (i32, i32) {
    %c0_i32 = arith.constant 0 : i32
    %c0_i32_0 = arith.constant 0 : i32
    %c0_i32_1 = arith.constant 0 : i32
    return %c0_i32, %c0_i32_0 : i32, i32
  }
  func.func @transform_5(%arg0: i32) -> (i32, i32) {
    %c0_i32 = arith.constant 0 : i32
    %c0_i32_0 = arith.constant 0 : i32
    return %arg0, %c0_i32 : i32, i32
  }
}

</mosaic_0001>

<bundles_post_ra>
// kernel: tpu_custom_call.1
= control target key start
LH: loop header
LB: loop body
LE: loop exit
PB: predicated region body
PF: predicated region fallthrough
CT: control target
= control target key end

     0   :  { %s957_s0 = inlined_call_operand.hbm [shape: f32[64,128], index: 0, kind: input, shape index: {}]   ;;  %s958_s1 = inlined_call_operand.hbm [shape: f32[128,256], index: 1, kind: input, shape index: {}]   ;;  %s959_s2 = inlined_call_operand.vmem [shape: f32[1,256], index: 2, kind: input, shape index: {}]   ;;  %s960_s3 = inlined_call_operand.vmem [shape: f32[1,128], index: 3, kind: input, shape index: {}]   ;;  %s961_s4 = inlined_call_operand.<no memory space> [shape: f32[1,1], index: 4, kind: input, shape index: {}]   ;;  %s962_s5 = inlined_call_operand.vmem [shape: f32[64,1], index: 5, kind: output, shape index: {}]  }
   0x1   :  { %v10_v0 = vstv %s961_s4 }
   0x2   :  { %11 = vst [vmem:[#allocation2] sm:$0x1] %v10_v0 }
   0x3   :  { %12 = vsyncpa [#allocation4], 0 }
   0x4   :  { %14 = vsyncpa [#allocation4 + $0x1], 0 }
   0x5   :  { %15 = vsyncpa [#allocation6], 0  ;;  %s812_s20 = smov 0   ;;  %s814_s21 = smov 0  }
   0x6   :  { %s816_s22 = smov 0   ;;  %s818_s23 = smov 0  }
   0x7 LB: > { %s545_s4 = sadd.s32 4294967295, %s770_s23   ;;  %p41_p0 = scmp.ne.s32.totalorder %s762_s21, %s758_s20  ;;  %s770_s23 = sphi %s818_s23, %s978_s23   ;;  %s766_s22 = sphi %s816_s22, %s977_s22   ;;  %s762_s21 = sphi %s814_s21, %s976_s21   ;;  %s758_s20 = sphi %s812_s20, %s975_s20  }
   0x8   : > { %p834_p1 = scmp.eq.s32.totalorder %s545_s4, 0  ;;  %p547_p2 = scmp.ge.s32.totalorder %s770_s23, 1 }
   0x9   : > { %p162_p3 = scmp.lt.s32.totalorder %s770_s23, 3  ;;  %s772_s27 = smov [#allocation5]  }
   0xa   : > { %s967_s24 = scalar_select %p834_p1, 1, 0 }
   0xb   : > { %p842_p4 = por %p834_p1, %p41_p0  ;;  %p846_p5 = pnand %p547_p2, %p162_p3 }
   0xc   : > { %s174_s28 = sshll.u32 %s772_s27, 4  ;;  %s859_s30 = sadd.s32 1, %s770_s23   ;;  %s175_s28 = int_to_ptr.vmem [resolvable:$true] %s174_s28 }
   0xd   : > { %s968_s25 = scalar_select %p842_p4, 1, 0 }
   0xe   : > { %s969_s26 = scalar_select %p846_p5, 1, 0 }
   0xf   : > { %p605_p6 = pneg %p846_p5  ;;  %s28_s6 = sadd.s32 1, %s766_s22 }
  0x10   : > { %s25_s7 = ssub.s32 %s770_s23, %s859_s30  ;;  %s689_s8 = scalar_lea.vmem %s175_s28, 4096 }
  0x11   : > { %p854_p7 = pnand %p605_p6, %p834_p1  ;;  %p690_p9 = scmp.ne.s32.totalorder %s175_s28, %s689_s8 }
  0x12   : > { %p697_p12 = scmp.lt.s32.totalorder %s175_s28, %s175_s28  ;;  %p698_p13 = scmp.lt.s32.totalorder %s689_s8, %s689_s8 }
  0x13   : > { %p680_p8 = pneg %p854_p7 }
  0x14   : > { %p699_p0 = por %p698_p13, %p697_p12 }
  0x15   : > { %p692_p10 = pnand %p690_p9, %p680_p8 }
  0x17   : > { %p693_p11 = pneg %p692_p10 }
  0x19   : > { %p700_p2 = pnand %p699_p0, %p693_p11 }
  0x1b   : > { %703 = shalt.err (!%p700_p2)
}
  0x1c   : > { %s773_s9 = smov 256   ;;  %s774_s10 = smov 16  }
  0x1d   : > { %608 = dma.hbm_to_vmem [thread:$0]  (!%p854_p7), %s958_s1, 4096, %s175_s28, [#allocation6], %s773_s9, %s773_s9, %s774_s10  }
  0x1e   : > { %p26_p3 = scmp.eq.s32.totalorder %s25_s7, 0  ;;  %p35_p6 = scmp.ne.s32.totalorder %s766_s22, %s762_s21 }
  0x1f   : > { %p36_p8 = scmp.eq.s32.totalorder %s770_s23, 0  ;;  %p614_p9 = scmp.lt.s32.totalorder %s770_s23, 2 }
  0x20   : > { %s876_s13 = scalar_select %p26_p3, %s766_s22, %s28_s6  }
  0x21   : > { %p37_p10 = por %p36_p8, %p35_p6  ;;  %s197_s14 = sand.u32 1, %s766_s22  }
  0x22   : > { %s550_s15 = sshll.u32 %s197_s14, 5  ;;  %s566_s16 = sshll.u32 %s770_s23, 9 }
  0x23   : > { %s883_s19 = scalar_lea.hbm %s957_s0, %s566_s16  ;;  %s201_s20 = scalar_lea.vmem [#allocation3], %s550_s15 }
  0x24   : > { %s208_s27 = sshll.u32 %s201_s20, 4  ;;  %p887_p7 = pnand %p614_p9, %p37_p10  ;;  %s885_s27 = int_to_ptr.vmem [resolvable:$true] %s208_s27 }
  0x25   : > { %s891_s29 = scalar_lea.sflag [#allocation4], %s197_s14  ;;  %s704_s6 = scalar_lea.hbm %s883_s19, 512 }
  0x26   : > { %p705_p11 = scmp.ne.s32.totalorder %s883_s19, %s704_s6  ;;  %p706_p12 = pneg %p887_p7 }
  0x27   : > { %s709_s9 = scalar_lea.hbm %s957_s0, 1024  ;;  %p710_p2 = scmp.lt.s32.totalorder %s883_s19, %s957_s0 }
  0x28   : > { %p707_p13 = pnand %p706_p12, %p705_p11  ;;  %p711_p3 = scmp.lt.s32.totalorder %s709_s9, %s704_s6 }
  0x2a   : > { %p708_p0 = pneg %p707_p13  ;;  %p712_p6 = por %p711_p3, %p710_p2 }
  0x2c   : > { %p713_p8 = pnand %p712_p6, %p708_p0 }
  0x2e   : > { %716 = shalt.err (!%p713_p8)
}
  0x2f   : > { %s717_s12 = scalar_lea.vmem %s885_s27, 512  ;;  %s775_s14 = smov [#allocation3]  }
  0x30   : > { %p718_p9 = scmp.ne.s32.totalorder %s885_s27, %s717_s12  ;;  %s722_s15 = sshll.u32 %s775_s14, 4  ;;  %s723_s15 = int_to_ptr.vmem [resolvable:$false] %s722_s15 }
  0x31   : > { %s724_s16 = scalar_lea.vmem %s723_s15, 1024  ;;  %p725_p13 = scmp.lt.s32.totalorder %s885_s27, %s723_s15 }
  0x32   : > { %p720_p10 = pnand %p718_p9, %p706_p12  ;;  %p726_p1 = scmp.lt.s32.totalorder %s724_s16, %s717_s12 }
  0x34   : > { %p721_p11 = pneg %p720_p10  ;;  %p727_p4 = por %p726_p1, %p725_p13 }
  0x36   : > { %p728_p5 = pnand %p727_p4, %p721_p11 }
  0x38   : > { %731 = shalt.err (!%p728_p5)
}
  0x39   : > { %s776_s17 = smov 128   ;;  %s777_s18 = smov 8  }
  0x3a   : > { %612 = dma.hbm_to_vmem [thread:$0]  (!%p887_p7), %s883_s19, 512, %s885_s27, %s891_s29, %s776_s17, %s776_s17, %s777_s18  }
  0x3b   : > { %p972_p12 = scmp.ne.s32.totalorder %s969_s26, 0 }
  0x3c   : > { %s222_s20 = sand.u32 (!%p972_p12), 1, %s762_s21   ;;  %p973_p1 = scmp.ne.s32.totalorder (!%p972_p12), %s968_s25, 0 }
  0x3d   : > { %220 = sbr.rel (%p972_p12) target bundleno = 483 (0x1e3), region = 40  ;;  %s554_s6 = sshll.u32 (!%p972_p12), %s222_s20, 5 }
  0x3e   : > { %s223_s7 = scalar_lea.sflag (!%p972_p12), [#allocation4], %s222_s20  ;;  %s915_s8 = scalar_lea.vmem (!%p972_p12), [#allocation3], %s554_s6 }
  0x42   : > { %749 = dma.done.wait (%p973_p1), %s223_s7, 512  }
  0x43   : > { %751 = vsyncadd (%p973_p1), %s223_s7, 4294966784  ;;  %p974_p4 = scmp.ne.s32.totalorder %s967_s24, 0 }
  0x45   : > { %753 = dma.done.wait (%p974_p4), [#allocation6], 4096  }
  0x46   : > { %755 = vsyncadd (%p974_p4), [#allocation6], 4294963200  ;;  %v778_v1 = vmov 0.0   ;;  %v299_v2 = vld [vmem:[#allocation5 + $0xf8] sm:$0xff]  ;;  %v298_v3 = vld [vmem:[#allocation5 + $0xf0] sm:$0xff]  ;;  %v302_v38 = vlaneseq  ;;  %s556_s27 = sshll.u32 %s545_s4, 2 }
  0x47   : > { %376 = vmatprep.mubr.f32.mxu0 %v778_v1  ;;  %388 = vmatprep.mubr.f32.mxu1 %v778_v1  ;;  %v297_v4 = vld [vmem:[#allocation5 + $0xe8] sm:$0xff]  ;;  %v296_v5 = vld [vmem:[#allocation5 + $0xe0] sm:$0xff]  ;;  %v295_v6 = vld [vmem:[#allocation5 + $0xd8] sm:$0xff]  ;;  %p259_p5 = scmp.lt.s32.totalorder %s556_s27, 7  ;;  %vm463_vm0 = vcmask 7168  }
  0x48   : > { %312 = vmatprep.subr.mxu0 %v299_v2  ;;  %567 = vmatprep.subr.mxu1 %v299_v2  ;;  %v294_v7 = vld [vmem:[#allocation5 + $0xd0] sm:$0xff]  ;;  %v293_v8 = vld [vmem:[#allocation5 + $0xc8] sm:$0xff]  ;;  %v292_v9 = vld [vmem:[#allocation5 + $0xc0] sm:$0xff]  ;;  %v303_v39 = vshrl.u32 %v302_v38, 7 }
  0x49   : > { %313 = vmatpush1.msra.mxu0 %v298_v3  ;;  %583 = vmatpush1.msra.mxu1 %v298_v3  ;;  %v291_v10 = vld [vmem:[#allocation5 + $0xb8] sm:$0xff]  ;;  %v290_v11 = vld [vmem:[#allocation5 + $0xb0] sm:$0xff]  ;;  %v289_v12 = vld [vmem:[#allocation5 + $0xa8] sm:$0xff]  ;;  %s980_s27 = smov (!%p259_p5, %s556_s27), 7 }
  0x4a   : > { %314 = vmatprep.subr.mxu0 %v297_v4  ;;  %568 = vmatprep.subr.mxu1 %v297_v4  ;;  %v288_v13 = vld [vmem:[#allocation5 + $0xa0] sm:$0xff]  ;;  %v287_v14 = vld [vmem:[#allocation5 + $0x98] sm:$0xff]  ;;  %v286_v15 = vld [vmem:[#allocation5 + $0x90] sm:$0xff]  ;;  %v308_v40 = vsub.s32 1, %v303_v39  ;;  %v304_v57 = vsub.s32 0, %v303_v39  ;;  %s557_s28 = sshll.u32 %s980_s27, 3 }
  0x4b   : > { %315 = vmatpush1.msra.mxu0 %v296_v5  ;;  %584 = vmatpush1.msra.mxu1 %v296_v5  ;;  %v285_v16 = vld [vmem:[#allocation5 + $0x88] sm:$0xff]  ;;  %v284_v17 = vld [vmem:[#allocation5 + $0x80] sm:$0xff]  ;;  %v283_v18 = vld [vmem:[#allocation5 + $0x78] sm:$0xff]  ;;  %s262_s10 = scalar_lea.vmem %s962_s5, %s557_s28 }
  0x4c   : > { %316 = vmatprep.subr.mxu0 %v295_v6  ;;  %569 = vmatprep.subr.mxu1 %v295_v6  ;;  %v282_v19 = vld [vmem:[#allocation5 + $0x70] sm:$0xff]  ;;  %v281_v20 = vld [vmem:[#allocation5 + $0x68] sm:$0xff]  ;;  %v280_v21 = vld [vmem:[#allocation5 + $0x60] sm:$0xff] }
  0x4d   : > { %317 = vmatpush1.msra.mxu0 %v294_v7  ;;  %585 = vmatpush1.msra.mxu1 %v294_v7  ;;  %v279_v22 = vld [vmem:[#allocation5 + $0x58] sm:$0xff]  ;;  %v278_v23 = vld [vmem:[#allocation5 + $0x50] sm:$0xff]  ;;  %v277_v24 = vld [vmem:[#allocation5 + $0x48] sm:$0xff] }
  0x4e   : > { %318 = vmatprep.subr.mxu0 %v293_v8  ;;  %570 = vmatprep.subr.mxu1 %v293_v8  ;;  %v276_v25 = vld [vmem:[#allocation5 + $0x40] sm:$0xff]  ;;  %v275_v26 = vld [vmem:[#allocation5 + $0x38] sm:$0xff]  ;;  %v274_v27 = vld [vmem:[#allocation5 + $0x30] sm:$0xff] }
  0x4f   : > { %319 = vmatpush1.msra.mxu0 %v292_v9  ;;  %586 = vmatpush1.msra.mxu1 %v292_v9  ;;  %v273_v28 = vld [vmem:[#allocation5 + $0x28] sm:$0xff]  ;;  %v272_v29 = vld [vmem:[#allocation5 + $0x20] sm:$0xff]  ;;  %v271_v30 = vld [vmem:[#allocation5 + $0x18] sm:$0xff] }
  0x50   : > { %320 = vmatprep.subr.mxu0 %v291_v10  ;;  %571 = vmatprep.subr.mxu1 %v291_v10  ;;  %v270_v31 = vld [vmem:[#allocation5 + $0x10] sm:$0xff]  ;;  %v269_v32 = vld [vmem:[#allocation5 + $0x8] sm:$0xff]  ;;  %v268_v33 = vld [vmem:[#allocation5] sm:$0xff] }
  0x51   : > { %321 = vmatpush1.msra.mxu0 %v290_v11  ;;  %587 = vmatpush1.msra.mxu1 %v290_v11  ;;  %v264_v34 = vld [vmem:[%s915_s8] sm:$0xff]  ;;  %v266_v35 = vld [vmem:[%s915_s8 + $0x10] sm:$0xff]  ;;  %v265_v36 = vld [vmem:[%s915_s8 + $0x8] sm:$0xff] }
  0x52   : > { %322 = vmatprep.subr.mxu0 %v289_v12  ;;  %572 = vmatprep.subr.mxu1 %v289_v12  ;;  %v267_v37 = vld [vmem:[%s915_s8 + $0x18] sm:$0xff] }
  0x53   : > { %323 = vmatpush1.msra.mxu0 %v288_v13  ;;  %588 = vmatpush1.msra.mxu1 %v288_v13  ;;  %v300_v41 = vld [vmem:[%s959_s2] sm:$0x3] }
  0x54   : > { %324 = vmatprep.subr.mxu0 %v287_v14  ;;  %573 = vmatprep.subr.mxu1 %v287_v14  ;;  %v309_v42 = vrot.slane %v300_v41, %v308_v40  ;;  %v305_v60 = vrot.slane %v300_v41, %v304_v57  ;;  %v562_v12 = vld [vmem:[%s960_s3] ss:$0 sm:$0xff] }
  0x55   : > { %325 = vmatpush1.msra.mxu0 %v286_v15  ;;  %589 = vmatpush1.msra.mxu1 %v286_v15 }
  0x56   : > { %326 = vmatprep.subr.mxu0 %v285_v16  ;;  %574 = vmatprep.subr.mxu1 %v285_v16 }
  0x57   : > { %327 = vmatpush1.msra.mxu0 %v284_v17  ;;  %590 = vmatpush1.msra.mxu1 %v284_v17 }
  0x58   : > { %328 = vmatprep.subr.mxu0 %v283_v18  ;;  %575 = vmatprep.subr.mxu1 %v283_v18 }
  0x59   : > { %329 = vmatpush1.msra.mxu0 %v282_v19  ;;  %591 = vmatpush1.msra.mxu1 %v282_v19 }
  0x5a   : > { %330 = vmatprep.subr.mxu0 %v281_v20  ;;  %576 = vmatprep.subr.mxu1 %v281_v20 }
  0x5b   : > { %331 = vmatpush1.msra.mxu0 %v280_v21  ;;  %592 = vmatpush1.msra.mxu1 %v280_v21 }
  0x5c   : > { %332 = vmatprep.subr.mxu0 %v279_v22  ;;  %577 = vmatprep.subr.mxu1 %v279_v22 }
  0x5d   : > { %333 = vmatpush1.msra.mxu0 %v278_v23  ;;  %593 = vmatpush1.msra.mxu1 %v278_v23 }
  0x5e   : > { %334 = vmatprep.subr.mxu0 %v277_v24  ;;  %578 = vmatprep.subr.mxu1 %v277_v24 }
  0x5f   : > { %335 = vmatpush1.msra.mxu0 %v276_v25  ;;  %594 = vmatpush1.msra.mxu1 %v276_v25 }
  0x60   : > { %336 = vmatprep.subr.mxu0 %v275_v26  ;;  %579 = vmatprep.subr.mxu1 %v275_v26  ;;  %v563_v26 = vld [vmem:[#allocation2] ss:$0 sm:$0xff] }
  0x61   : > { %337 = vmatpush1.msra.mxu0 %v274_v27  ;;  %595 = vmatpush1.msra.mxu1 %v274_v27 }
  0x62   : > { %338 = vmatprep.subr.mxu0 %v273_v28  ;;  %580 = vmatprep.subr.mxu1 %v273_v28 }
  0x63   : > { %339 = vmatpush1.msra.mxu0 %v272_v29  ;;  %596 = vmatpush1.msra.mxu1 %v272_v29 }
  0x64   : > { %340 = vmatprep.subr.mxu0 %v271_v30  ;;  %581 = vmatprep.subr.mxu1 %v271_v30 }
  0x65   : > { %341 = vmatpush1.msra.mxu0 %v270_v31  ;;  %597 = vmatpush1.msra.mxu1 %v270_v31 }
  0x66   : > { %342 = vmatprep.subr.mxu0 %v269_v32  ;;  %582 = vmatprep.subr.mxu1 %v269_v32 }
  0x67   : > { %343 = vmatpush1.msra.mxu0 %v268_v33  ;;  %598 = vmatpush1.msra.mxu1 %v268_v33 }
  0x68   : > { %377 = vmatmul.mubr.f32.vlgmr.msra.gmra.mxu0 %v264_v34  ;;  %389 = vmatmul.mubr.f32.vlgmr.msra.gmra.mxu1 %v266_v35 }
  0x69   : > { %382 = vmatprep.mubr.f32.mxu0 %v778_v1  ;;  %394 = vmatprep.mubr.f32.mxu1 %v778_v1 }
  0x6c   : > { %383 = vmatmul.mubr.f32.gmra.mxu0 %v265_v36  ;;  %395 = vmatmul.mubr.f32.gmra.mxu1 %v267_v37 }
 0x128   : > { %v378_v43 = vpop.f32.mrf.mxu0  ;;  %v390_v44 = vpop.f32.mrf.mxu1 }
 0x129   : > { %v379_v61 = vadd.f32 %v378_v43, %v305_v60  ;;  %v391_v62 = vadd.f32 %v390_v44, %v305_v60 }
 0x12a   : > { %v380_v45 = vpop.f32.mrf.mxu0  ;;  %v392_v46 = vpop.f32.mrf.mxu1 }
 0x12b   : > { %v381_v47 = vadd.f32 %v380_v45, %v309_v42  ;;  %v393_v48 = vadd.f32 %v392_v46, %v309_v42 }
 0x12c   : > { %v384_v49 = vpop.f32.mrf.mxu0  ;;  %v396_v50 = vpop.f32.mrf.mxu1 }
 0x12d   : > { %v558_v51 = vmul.f32 -1.442695, %v381_v47  ;;  %v560_v52 = vmul.f32 -1.442695, %v393_v48  ;;  %v385_v2 = vadd.f32 %v384_v49, %v305_v60  ;;  %v397_v4 = vadd.f32 %v396_v50, %v305_v60 }
 0x12e   : > { %v386_v53 = vpop.f32.mrf.mxu0  ;;  %v398_v54 = vpop.f32.mrf.mxu1 }
 0x12f   : > { %654 = vpow2.f32 %v558_v51  ;;  %v387_v55 = vadd.f32 %v386_v53, %v309_v42  ;;  %v399_v56 = vadd.f32 %v398_v54, %v309_v42 }
 0x130   : > { %656 = vpow2.f32 %v560_v52 }
 0x131   : > { %v559_v58 = vmul.f32 -1.442695, %v387_v55  ;;  %v561_v59 = vmul.f32 -1.442695, %v399_v56 }
 0x133   : > { %658 = vpow2.f32 %v559_v58 }
 0x134   : > { %660 = vpow2.f32 %v561_v59 }
 0x135   : > { %662 = vtanh.f32 %v379_v61 }
 0x136   : > { %664 = vtanh.f32 %v391_v62 }
 0x13c   : > { %v655_v63 = vpop.eup %654 }
 0x13d   : > { %v657_v0 = vpop.eup %656  ;;  %v417_v1 = vadd.f32 1.0, %v655_v63 }
 0x13e   : > { %v419_v3 = vadd.f32 1.0, %v657_v0 }
 0x13f   : > { %666 = vrcp.f32 %v417_v1 }
 0x140   : > { %v659_v5 = vpop.eup %658  ;;  %668 = vrcp.f32 %v419_v3 }
 0x141   : > { %v661_v6 = vpop.eup %660  ;;  %670 = vtanh.f32 %v385_v2  ;;  %v418_v7 = vadd.f32 1.0, %v659_v5 }
 0x142   : > { %672 = vtanh.f32 %v397_v4  ;;  %v420_v8 = vadd.f32 1.0, %v661_v6  ;;  %v663_v9 = vpop.eup %662 }
 0x143   : > { %674 = vrcp.f32 %v418_v7  ;;  %v665_v10 = vpop.eup %664 }
 0x144   : > { %676 = vrcp.f32 %v420_v8 }
 0x14c   : > { %v667_v11 = vpop.eup %666 }
 0x14d   : > { %v669_v13 = vpop.eup %668  ;;  %v429_v14 = vmul.f32 %v667_v11, %v663_v9 }
 0x14e   : > { %v671_v15 = vpop.eup %670  ;;  %v431_v16 = vmul.f32 %v669_v13, %v665_v10 }
 0x14f   : > { %v673_v17 = vpop.eup %672  ;;  %v440_v18 = vmul.f32 %v562_v12, %v429_v14 }
 0x150   : > { %v675_v19 = vpop.eup %674  ;;  %v442_v20 = vmul.f32 %v562_v12, %v431_v16 }
 0x151   : > { %v677_v21 = vpop.eup %676  ;;  %444 = vadd.xlane.f32.xlu0 %v440_v18  ;;  %v430_v22 = vmul.f32 %v675_v19, %v671_v15 }
 0x152   : > { %448 = vadd.xlane.f32.xlu1 %v442_v20  ;;  %v432_v23 = vmul.f32 %v677_v21, %v673_v17 }
 0x153   : > { %v441_v24 = vmul.f32 %v562_v12, %v430_v22 }
 0x154   : > { %v443_v25 = vmul.f32 %v562_v12, %v432_v23 }
 0x155   : > { %446 = vadd.xlane.f32.xlu0 %v441_v24 }
 0x156   : > { %450 = vadd.xlane.f32.xlu1 %v443_v25 }
 0x1da   : > { %v445_v27 = vpop.xlane.xlu0 %444 }
 0x1db   : > { %v449_v28 = vpop.xlane.xlu1 %448  ;;  %v459_v29 = vadd.f32 %v563_v26, %v445_v27 }
 0x1dc   : > { %v461_v33 = vadd.f32 %v563_v26, %v449_v28 }
 0x1dd   : > { %464 = vst.msk [vmem:[%s262_s10] sm:$0xff] %vm463_vm0, %v459_v29 }
 0x1de   : > { %v447_v30 = vpop.xlane.xlu0 %446  ;;  %466 = vst.msk [vmem:[%s262_s10 + $0x10] sm:$0xff] %vm463_vm0, %v461_v33 }
 0x1df   : > { %v451_v31 = vpop.xlane.xlu1 %450  ;;  %v460_v32 = vadd.f32 %v563_v26, %v447_v30 }
 0x1e0   : > { %v462_v34 = vadd.f32 %v563_v26, %v451_v31 }
 0x1e1   : > { %465 = vst.msk [vmem:[%s262_s10 + $0x8] sm:$0xff] %vm463_vm0, %v460_v32 }
 0x1e2   : > { %467 = vst.msk [vmem:[%s262_s10 + $0x18] sm:$0xff] %vm463_vm0, %v462_v34 }
 0x1e3 PF: > { %p18_p7 = scmp.ge.s32.totalorder %s859_s30, 4   ;;  %s975_s20 = smov %s762_s21 }
 0x1e4   : > { %s976_s21 = smov %s766_s22  ;;  %s977_s22 = smov %s876_s13 }
 0x1e5   : > { %s978_s23 = smov %s859_s30  ;;  %20 = sbr.rel (!%p18_p7) target bundleno = 7 (0x7), region = 84 }
 0x1ea   :  { %490 = vsyncpa [#allocation4], 1 }
 0x1eb   :  { %492 = vsyncpa [#allocation4 + $0x1], 1 }
 0x1ec   :  { %493 = vsyncpa [#allocation6], 1 }

</bundles_post_ra>
